<compile_context>
chip_gen: v5e
topology: v5e:2x2
jax: 0.10.0
libtpu: 0.0.40
codegen_flags: <defaults>
</compile_context>

<pallas_src>
import functools

import jax
import jax.numpy as jnp
from jax.experimental import pallas as pl
from jax.experimental.pallas import tpu as pltpu


def _round_up(a: int, m: int) -> int:
    return ((a + m - 1) // m) * m


# ---------------------------------------------------------------------------
# Hardware-aware knobs (computed once, cached)
# ---------------------------------------------------------------------------

@functools.lru_cache(maxsize=None)
def _vmem_limit_bytes() -> int:
    """Generation-aware scoped-VMEM request, leaving pipeline/scratch headroom."""
    try:
        cap = int(pltpu.get_tpu_info().vmem_capacity_bytes)
    except Exception:
        cap = 64 * 1024 * 1024  # conservative fallback: v7x per-TensorCore VMEM
    # ~48 MiB on v7x (64 MiB physical), ~96 MiB on v5e/v6e (128 MiB physical).
    return min(cap * 3 // 4, 100 * 1024 * 1024)


@functools.lru_cache(maxsize=None)
def _buffered_one_supported() -> bool:
    """One-time feature probe: can grid-invariant inputs be single-buffered?"""
    try:
        def _copy(x_ref, o_ref):
            o_ref[...] = x_ref[...]

        fn = pl.pallas_call(
            _copy,
            out_shape=jax.ShapeDtypeStruct((8, 128), jnp.float32),
            grid=(2,),
            in_specs=[pl.BlockSpec((8, 128), lambda i: (0, 0),
                                   pipeline_mode=pl.Buffered(1))],
            out_specs=pl.BlockSpec((8, 128), lambda i: (0, 0)),
        )
        jax.jit(fn).lower(jax.ShapeDtypeStruct((8, 128), jnp.float32)).compile()
        return True
    except Exception:
        return False


# ---------------------------------------------------------------------------
# Kernels
# ---------------------------------------------------------------------------

def _mlp_kernel_resident(x_ref, wd_ref, bd_ref, wu_ref, bu_ref, o_ref):
    # x_ref:(tm,D_in)  wd:(D_in,H_p)  bd:(1,H_p)  wu:(H_p,D_out_p)  bu:(1,D_out_p)
    x = x_ref[...].astype(wd_ref.dtype)              # in-kernel cast (no host pass)
    h = jnp.dot(x, wd_ref[...], preferred_element_type=jnp.float32)
    h = jnp.maximum(h + bd_ref[...], 0.0)            # ReLU; dropout(p=0) == identity
    y = jnp.dot(h.astype(wu_ref.dtype), wu_ref[...],
                preferred_element_type=jnp.float32)
    o_ref[...] = (y + bu_ref[...]).astype(o_ref.dtype)


def _mlp_kernel_htiled(x_ref, wd_ref, bd_ref, wu_ref, bu_ref, o_ref, acc_ref):
    # Hidden dim tiled along grid axis 1 (reduction axis, 'arbitrary', last).
    k = pl.program_id(1)

    @pl.when(k == 0)
    def _():
        acc_ref[...] = jnp.zeros_like(acc_ref)

    x = x_ref[...].astype(wd_ref.dtype)
    h = jnp.dot(x, wd_ref[...], preferred_element_type=jnp.float32)
    h = jnp.maximum(h + bd_ref[...], 0.0)
    acc_ref[...] += jnp.dot(h.astype(wu_ref.dtype), wu_ref[...],
                            preferred_element_type=jnp.float32)

    @pl.when(k == pl.num_programs(1) - 1)
    def _():
        o_ref[...] = (acc_ref[...] + bu_ref[...]).astype(o_ref.dtype)


# ---------------------------------------------------------------------------
# Parameter prep (one-time; amortized over all forward calls)
# ---------------------------------------------------------------------------

def prepare_mlp_params(w_down, b_down, w_up, b_up, *, weight_dtype=jnp.bfloat16):
    """Pad hidden/output dims to lane-dense multiples of 128 and cast weights.

    w_down: [D_in, H], w_up: [H, D_out]  (PyTorch nn.Linear stores [out, in];
    transpose once here when porting a real checkpoint.)
    Zero padding is exact: zeros flow through bias, ReLU and both matmuls as
    zeros.  bf16 weights (default) halve weight DMA bytes and take the MXU
    fast path on v5e/v6e/v7x; biases and accumulation stay f32.
    """
    D_in, H = w_down.shape
    H2, D_out = w_up.shape
    assert H2 == H
    H_p = _round_up(H, 128)
    D_out_p = _round_up(D_out, 128)
    wd = jnp.pad(w_down, ((0, 0), (0, H_p - H))).astype(weight_dtype)
    bd = jnp.pad(b_down, (0, H_p - H)).astype(jnp.float32).reshape(1, H_p)
    wu = jnp.pad(w_up, ((0, H_p - H), (0, D_out_p - D_out))).astype(weight_dtype)
    bu = jnp.pad(b_up, (0, D_out_p - D_out)).astype(jnp.float32).reshape(1, D_out_p)
    return dict(wd=wd, bd=bd, wu=wu, bu=bu,
                D_in=D_in, H=H, D_out=D_out, H_p=H_p, D_out_p=D_out_p)


def _choose_tm(tm_req, N, D_in, H_p, D_out_p, x_isz, w_isz, o_isz,
               resident_weight_bytes, tiled, tk, vmem_limit):
    """Largest row tile (multiple of 8) whose VMEM footprint (double-buffered
    x/out, resident or tiled weights, f32 h + cast copies, accumulator) fits."""
    tm = max(8, min(_round_up(tm_req, 8), _round_up(N, 8)))
    budget = int(vmem_limit * 0.85)
    while True:
        if tiled:
            fixed = (2 * (D_in * tk + tk * D_out_p) * w_isz    # wd/wu double buffers
                     + 2 * (tk + D_out_p) * 4)                 # bd/bu double buffers
            per_tile = (2 * tm * D_in * x_isz                  # x double buffer
                        + 2 * tm * D_out_p * o_isz             # out double buffer
                        + tm * D_out_p * 4                     # f32 accumulator scratch
                        + tm * tk * (4 + w_isz)                # h (f32) + cast copy
                        + tm * D_in * w_isz)                   # x cast copy
        else:
            fixed = resident_weight_bytes                      # single-buffered weights
            per_tile = (2 * tm * D_in * x_isz
                        + 2 * tm * D_out_p * o_isz
                        + tm * H_p * (4 + w_isz)               # h (f32) + cast copy
                        + tm * D_in * w_isz                    # x cast copy
                        + tm * D_out_p * 4)                    # y (f32) before cast
        if fixed + per_tile <= budget or tm <= 8:
            return tm
        tm = max(8, _round_up(tm // 2, 8))


# ---------------------------------------------------------------------------
# Forward
# ---------------------------------------------------------------------------

def mlp_forward(x, params, *, tm=512, variant=None, tk=None):
    """Fused MLP forward: relu(x @ Wd + bd) @ Wu + bu   (dropout p=0 == id).

    x: [..., D_in] in caller dtype (cast to the weight dtype inside the
    kernel); params: output of prepare_mlp_params().
    variant: None (auto size gate) | "resident" | "htiled".
    """
    D_in, H_p = params["D_in"], params["H_p"]
    D_out, D_out_p = params["D_out"], params["D_out_p"]
    wd, bd, wu, bu = params["wd"], params["bd"], params["wu"], params["bu"]
    assert x.shape[-1] == D_in
    lead = x.shape[:-1]
    x2 = x.reshape(-1, D_in)
    N = x2.shape[0]
    out_dtype = x.dtype

    x_isz = jnp.dtype(x.dtype).itemsize
    w_isz = jnp.dtype(wd.dtype).itemsize
    o_isz = jnp.dtype(out_dtype).itemsize
    vmem_limit = _vmem_limit_bytes()

    weight_bytes = (D_in * H_p + H_p * D_out_p) * w_isz + (H_p + D_out_p) * 4
    if variant is None:
        # Keep whole weights VMEM-resident while they comfortably fit
        # (~<29 MiB on v7x, ~<58 MiB on v5e/v6e); otherwise tile over H.
        variant = "resident" if weight_bytes <= int(vmem_limit * 0.6) else "htiled"
    tiled = variant == "htiled"

    if tk is None:
        # 256-wide contraction pushes for v6e/v7x 2x256^2 MXUs; 128 otherwise.
        tk = 256 if H_p % 256 == 0 else 128
    tk = min(tk, H_p)
    assert H_p % tk == 0, "tk must divide the padded hidden dim"

    tm_eff = _choose_tm(tm, N, D_in, H_p, D_out_p, x_isz, w_isz, o_isz,
                        weight_bytes, tiled, tk, vmem_limit)
    row_grid = pl.cdiv(N, tm_eff)

    x_reads = (H_p // tk) if tiled else 1
    cost = pl.CostEstimate(
        flops=2 * N * (D_in * H_p + H_p * D_out_p),
        transcendentals=0,
        bytes_accessed=(N * D_in * x_isz * x_reads + weight_bytes
                        + N * D_out_p * o_isz))

    if not tiled:
        # Grid-invariant weights/biases: single-buffer them when supported so
        # they do not pay 2x VMEM for pipelining they don't need.
        resident_kw = ({"pipeline_mode": pl.Buffered(1)}
                       if _buffered_one_supported() else {})
        in_specs = [
            pl.BlockSpec((tm_eff, D_in), lambda i: (i, 0)),
            pl.BlockSpec((D_in, H_p), lambda i: (0, 0), **resident_kw),
            pl.BlockSpec((1, H_p), lambda i: (0, 0), **resident_kw),
            pl.BlockSpec((H_p, D_out_p), lambda i: (0, 0), **resident_kw),
            pl.BlockSpec((1, D_out_p), lambda i: (0, 0), **resident_kw),
        ]
        y2 = pl.pallas_call(
            _mlp_kernel_resident,
            out_shape=jax.ShapeDtypeStruct((N, D_out_p), out_dtype),
            grid=(row_grid,),
            in_specs=in_specs,
            out_specs=pl.BlockSpec((tm_eff, D_out_p), lambda i: (i, 0)),
            compiler_params=pltpu.CompilerParams(
                # TODO(synk): on v7x consider pltpu.CORE_PARALLEL here so the
                #             row axis provably shards across both TensorCores.
                dimension_semantics=("parallel",),
                vmem_limit_bytes=vmem_limit,
            ),
            cost_estimate=cost,
        )(x2, wd, bd, wu, bu)
    else:
        in_specs = [
            pl.BlockSpec((tm_eff, D_in), lambda i, k: (i, 0)),
            pl.BlockSpec((D_in, tk), lambda i, k: (0, k)),
            pl.BlockSpec((1, tk), lambda i, k: (0, k)),
            pl.BlockSpec((tk, D_out_p), lambda i, k: (k, 0)),
            pl.BlockSpec((1, D_out_p), lambda i, k: (0, 0)),
        ]
        y2 = pl.pallas_call(
            _mlp_kernel_htiled,
            out_shape=jax.ShapeDtypeStruct((N, D_out_p), out_dtype),
            grid=(row_grid, H_p // tk),
            in_specs=in_specs,
            out_specs=pl.BlockSpec((tm_eff, D_out_p), lambda i, k: (i, 0)),
            scratch_shapes=[pltpu.VMEM((tm_eff, D_out_p), jnp.float32)],
            compiler_params=pltpu.CompilerParams(
                dimension_semantics=("parallel", "arbitrary"),
                vmem_limit_bytes=vmem_limit,
            ),
            cost_estimate=cost,
        )(x2, wd, bd, wu, bu)

    if D_out_p != D_out:
        y2 = y2[:, :D_out]      # drop lane-padding columns (exact zeros)
    return y2.reshape(*lead, D_out)


if __name__ == "__main__":
    # MLP(input_dim=50, hidden_dim=200, output_dim=24) applied to a
    # (batch=4, seq=10, 50) activation tensor -- deliberately non-128-aligned
    # feature dims and a non-tile-multiple row count (40 rows).
    B, S, D_in, H, D_out = 4, 10, 50, 200, 24
    key = jax.random.PRNGKey(0)
    kx, kwd, kbd, kwu, kbu = jax.random.split(key, 5)

    x = jax.random.normal(kx, (B, S, D_in), dtype=jnp.float32)
    # Weights generated directly in [in, out] layout (PyTorch nn.Linear stores
    # [out, in]; a real port transposes once inside prepare_mlp_params).
    w_down = jax.random.normal(kwd, (D_in, H), dtype=jnp.float32) * 0.1
    b_down = jax.random.normal(kbd, (H,), dtype=jnp.float32) * 0.1
    w_up = jax.random.normal(kwu, (H, D_out), dtype=jnp.float32) * 0.1
    b_up = jax.random.normal(kbu, (D_out,), dtype=jnp.float32) * 0.1

    # Reference (plain JAX).
    ref = jnp.maximum(x @ w_down + b_down, 0.0) @ w_up + b_up

    # 1) Default path: bf16 weights resident in VMEM, default tm (clamped to N).
    params_bf16 = prepare_mlp_params(w_down, b_down, w_up, b_up)
    y = jax.block_until_ready(mlp_forward(x, params_bf16))
    assert y.shape == (B, S, D_out)
    assert jnp.allclose(y, ref, atol=5e-2, rtol=5e-2)

    # 2) f32 weights + small tm to exercise a multi-step row grid with a
    #    partial tail tile (40 rows = 16 + 16 + 8): strict numerical check.
    params_f32 = prepare_mlp_params(w_down, b_down, w_up, b_up,
                                    weight_dtype=jnp.float32)
    y32 = jax.block_until_ready(mlp_forward(x, params_f32, tm=16))
    assert jnp.allclose(y32, ref, atol=1e-4, rtol=1e-4)

    # 3) Forced H-tiled accumulator variant (the path used when the weights are
    #    too large to stay VMEM-resident, e.g. huge hidden dims on v7x):
    #    2 reduction steps over the padded hidden dim (256 = 2 x 128).
    y_t = jax.block_until_ready(
        mlp_forward(x, params_bf16, tm=16, variant="htiled", tk=128))
    assert jnp.allclose(y_t, ref, atol=5e-2, rtol=5e-2)

    print("KERNEL_OK")
</pallas_src>

<mosaic_0001>
module attributes {stable_mosaic.version = 11 : i64} {
  func.func @_mlp_kernel_resident(%arg0: i32, %arg1: memref<40x50xf32, #tpu.memory_space<vmem>>, %arg2: memref<50x256xbf16, #tpu.memory_space<vmem>>, %arg3: memref<1x256xf32, #tpu.memory_space<vmem>>, %arg4: memref<256x128xbf16, #tpu.memory_space<vmem>>, %arg5: memref<1x128xf32, #tpu.memory_space<vmem>>, %arg6: memref<40x128xf32, #tpu.memory_space<vmem>>) attributes {dimension_semantics = [#tpu.dimension_semantics<parallel>], iteration_bounds = array<i64: 1>, scalar_prefetch = 0 : i64, scratch_operands = 0 : i64, tpu.core_type = #tpu.core_type<tc>, window_params = [{transform_indices = @transform_0, window_bounds = array<i64: 40, 50>}, {pipeline_mode = #tpu.pipeline_mode<synchronous>, transform_indices = @transform_1, window_bounds = array<i64: 50, 256>}, {pipeline_mode = #tpu.pipeline_mode<synchronous>, transform_indices = @transform_2, window_bounds = array<i64: 1, 256>}, {pipeline_mode = #tpu.pipeline_mode<synchronous>, transform_indices = @transform_3, window_bounds = array<i64: 256, 128>}, {pipeline_mode = #tpu.pipeline_mode<synchronous>, transform_indices = @transform_4, window_bounds = array<i64: 1, 128>}, {transform_indices = @transform_5, window_bounds = array<i64: 40, 128>}]} {
    %c0 = arith.constant 0 : index
    %c0_0 = arith.constant 0 : index
    %0 = vector.load %arg1[%c0, %c0_0] : memref<40x50xf32, #tpu.memory_space<vmem>>, vector<40x50xf32>
    %1 = arith.truncf %0 : vector<40x50xf32> to vector<40x50xbf16>
    %c0_1 = arith.constant 0 : index
    %c0_2 = arith.constant 0 : index
    %2 = vector.load %arg2[%c0_1, %c0_2] : memref<50x256xbf16, #tpu.memory_space<vmem>>, vector<50x256xbf16>
    %cst = arith.constant dense<0.000000e+00> : vector<40x256xf32>
    %3 = tpu.matmul %1, %2, %cst {dimension_numbers = #tpu.dot_dimension_numbers<[1], [0], [0], [1], [0, 0, 1, 1], [], []>} : vector<40x50xbf16>, vector<50x256xbf16>, vector<40x256xf32> -> vector<40x256xf32>
    %c0_3 = arith.constant 0 : index
    %c0_4 = arith.constant 0 : index
    %4 = vector.load %arg3[%c0_3, %c0_4] : memref<1x256xf32, #tpu.memory_space<vmem>>, vector<1x256xf32>
    %5 = vector.broadcast %4 : vector<1x256xf32> to vector<40x256xf32>
    %6 = arith.addf %3, %5 : vector<40x256xf32>
    %cst_5 = arith.constant 0.000000e+00 : f32
    %7 = vector.broadcast %cst_5 : f32 to vector<40x256xf32>
    %8 = arith.maximumf %6, %7 : vector<40x256xf32>
    %9 = arith.truncf %8 : vector<40x256xf32> to vector<40x256xbf16>
    %c0_6 = arith.constant 0 : index
    %c0_7 = arith.constant 0 : index
    %10 = vector.load %arg4[%c0_6, %c0_7] : memref<256x128xbf16, #tpu.memory_space<vmem>>, vector<256x128xbf16>
    %cst_8 = arith.constant dense<0.000000e+00> : vector<40x128xf32>
    %11 = tpu.matmul %9, %10, %cst_8 {dimension_numbers = #tpu.dot_dimension_numbers<[1], [0], [0], [1], [0, 0, 1, 1], [], []>} : vector<40x256xbf16>, vector<256x128xbf16>, vector<40x128xf32> -> vector<40x128xf32>
    %c0_9 = arith.constant 0 : index
    %c0_10 = arith.constant 0 : index
    %12 = vector.load %arg5[%c0_9, %c0_10] : memref<1x128xf32, #tpu.memory_space<vmem>>, vector<1x128xf32>
    %13 = vector.broadcast %12 : vector<1x128xf32> to vector<40x128xf32>
    %14 = arith.addf %11, %13 : vector<40x128xf32>
    %c0_11 = arith.constant 0 : index
    %c0_12 = arith.constant 0 : index
    %15 = vector.load %arg6[%c0_11, %c0_12] : memref<40x128xf32, #tpu.memory_space<vmem>>, vector<40x128xf32>
    tpu.vector_store %arg6[%c0_11, %c0_12], %14 {strides = array<i32>} : memref<40x128xf32, #tpu.memory_space<vmem>>, vector<40x128xf32>,
    return
  }
  func.func @transform_0(%arg0: i32) -> (i32, i32) {
    %c0_i32 = arith.constant 0 : i32
    %c0_i32_0 = arith.constant 0 : i32
    return %arg0, %c0_i32 : i32, i32
  }
  func.func @transform_1(%arg0: i32) -> (i32, i32) {
    %c0_i32 = arith.constant 0 : i32
    %c0_i32_0 = arith.constant 0 : i32
    %c0_i32_1 = arith.constant 0 : i32
    return %c0_i32, %c0_i32_0 : i32, i32
  }
  func.func @transform_2(%arg0: i32) -> (i32, i32) {
    %c0_i32 = arith.constant 0 : i32
    %c0_i32_0 = arith.constant 0 : i32
    %c0_i32_1 = arith.constant 0 : i32
    return %c0_i32, %c0_i32_0 : i32, i32
  }
  func.func @transform_3(%arg0: i32) -> (i32, i32) {
    %c0_i32 = arith.constant 0 : i32
    %c0_i32_0 = arith.constant 0 : i32
    %c0_i32_1 = arith.constant 0 : i32
    return %c0_i32, %c0_i32_0 : i32, i32
  }
  func.func @transform_4(%arg0: i32) -> (i32, i32) {
    %c0_i32 = arith.constant 0 : i32
    %c0_i32_0 = arith.constant 0 : i32
    %c0_i32_1 = arith.constant 0 : i32
    return %c0_i32, %c0_i32_0 : i32, i32
  }
  func.func @transform_5(%arg0: i32) -> (i32, i32) {
    %c0_i32 = arith.constant 0 : i32
    %c0_i32_0 = arith.constant 0 : i32
    return %arg0, %c0_i32 : i32, i32
  }
}

</mosaic_0001>

<bundles_post_ra>
// kernel: tpu_custom_call.1
= control target key start
LH: loop header
LB: loop body
LE: loop exit
PB: predicated region body
PF: predicated region fallthrough
CT: control target
= control target key end

     0   :  { %10 = vsyncpa [#allocation3], 0  ;;  %s748_s0 = inlined_call_operand.hbm [shape: f32[40,50], index: 0, kind: input, shape index: {}]   ;;  %s749_s1 = inlined_call_operand.hbm [shape: bf16[50,256], index: 1, kind: input, shape index: {}]   ;;  %s750_s2 = inlined_call_operand.hbm [shape: f32[1,256], index: 2, kind: input, shape index: {}]   ;;  %s751_s3 = inlined_call_operand.hbm [shape: bf16[256,128], index: 3, kind: input, shape index: {}]   ;;  %s752_s4 = inlined_call_operand.vmem [shape: f32[1,128], index: 4, kind: input, shape index: {}]   ;;  %s753_s5 = inlined_call_operand.hbm [shape: f32[40,128], index: 5, kind: output, shape index: {}]  }
   0x1   :  { %11 = vsyncpa [#allocation6], 0 }
   0x2   :  { %12 = vsyncpa [#allocation9], 0 }
   0x3   :  { %13 = vsyncpa [#allocation4], 0  ;;  %s31_s20 = sshll.u32 %s749_s1, 4  ;;  %s676_s21 = smov [#allocation5]   ;;  %s32_s20 = int_to_ptr.hbm [resolvable:$true] %s31_s20 }
   0x4   :  { %s33_s22 = sshll.u32 %s676_s21, 4  ;;  %s18_s25 = sshll.u32 %s748_s0, 4  ;;  %s34_s22 = int_to_ptr.vmem [resolvable:$true] %s33_s22  ;;  %s19_s25 = int_to_ptr.hbm [resolvable:$true] %s18_s25 }
   0x5   :  { %s677_s26 = smov 128   ;;  %s678_s27 = smov 8  }
   0x6   :  { %39 = dma.hbm_to_vmem [thread:$0]  %s32_s20, 896, %s34_s22, [#allocation6], %s677_s26, %s677_s26, %s678_s27  }
   0x7   :  { %s679_s28 = smov [#allocation2]   ;;  %s45_s1 = sshll.u32 %s750_s2, 4  ;;  %s46_s1 = int_to_ptr.hbm [resolvable:$true] %s45_s1 }
   0x8   :  { %s20_s29 = sshll.u32 %s679_s28, 4  ;;  %s55_s8 = sshll.u32 %s751_s3, 4  ;;  %s21_s29 = int_to_ptr.vmem [resolvable:$true] %s20_s29  ;;  %s56_s8 = int_to_ptr.hbm [resolvable:$true] %s55_s8 }
   0x9   :  { %26 = dma.hbm_to_vmem [thread:$0]  %s19_s25, 640, %s21_s29, [#allocation3], %s677_s26, %s677_s26, %s678_s27  }
   0xa   :  { %s680_s9 = smov [#allocation7]   ;;  %s681_s11 = smov [#allocation8]  }
   0xb   :  { %s47_s10 = sshll.u32 %s680_s9, 4  ;;  %s57_s12 = sshll.u32 %s681_s11, 4  ;;  %s48_s10 = int_to_ptr.vmem [resolvable:$true] %s47_s10  ;;  %s58_s12 = int_to_ptr.vmem [resolvable:$true] %s57_s12 }
   0xc   :  { %50 = dma.hbm_to_vmem [thread:$0]  %s46_s1, 32, %s48_s10, [#allocation6]  }
   0xd   :  { %s682_s13 = smov 64   ;;  %s683_s2 = smov 4  }
   0xe   :  { %63 = dma.hbm_to_vmem [thread:$0]  %s56_s8, 2048, %s58_s12, [#allocation9], %s682_s13, %s682_s13, %s683_s2  }
   0xf   :  { %668 = dma.done.wait [#allocation3], 640  }
  0x10   :  { %669 = vsyncadd [#allocation3], 4294966656 }
  0x11   :  { %670 = dma.done.wait [#allocation6], 928  }
  0x12   :  { %671 = vsyncadd [#allocation6], 4294966368 }
  0x13   :  { %672 = dma.done.wait [#allocation9], 2048  }
  0x14   :  { %673 = vsyncadd [#allocation9], 4294965248  ;;  %v97_v0 = vld [vmem:[#allocation5 + $0x30] sm:$0x11]  ;;  %vm149_vm0 = vcmask 1040384   ;;  %v83_v25 = vld [vmem:[#allocation2] sm:$0xff] }
  0x15   :  { %v123_v1 = vunpack.c.l.b16 %v97_v0  ;;  %v124_v2 = vunpack.c.h.b16 %v97_v0  ;;  %v440_v3 = vld [vmem:[#allocation5 + $0x20] sm:$0xf]  ;;  %v521_v6 = vld [vmem:[#allocation5 + $0x24] sm:$0xf0]  ;;  %v520_v7 = vld [vmem:[#allocation5 + $0x24] sm:$0xf] }
  0x16   :  { %v442_v8 = vld [vmem:[#allocation5 + $0x28] sm:$0xf0]  ;;  %v441_v11 = vor.u32 %v521_v6, %v440_v3  ;;  %v432_v13 = vld [vmem:[#allocation5 + $0x10] sm:$0xf]  ;;  %v519_v14 = vld [vmem:[#allocation5 + $0x14] sm:$0xf0] }
  0x17   :  { %v131_v4 = vpack.c.b16 %v123_v1, %v123_v1  ;;  %v132_v5 = vpack.c.b16 %v124_v2, %v124_v2  ;;  %v445_v12 = vor.u32 %v520_v7, %v442_v8  ;;  %v518_v15 = vld [vmem:[#allocation5 + $0x14] sm:$0xf]  ;;  %v434_v16 = vld [vmem:[#allocation5 + $0x18] sm:$0xf0]  ;;  %v433_v17 = vor.u32 %v519_v14, %v432_v13  ;;  %v424_v19 = vld [vmem:[#allocation5] sm:$0xf] }
  0x18   :  { %v437_v18 = vor.u32 %v518_v15, %v434_v16  ;;  %v517_v20 = vld [vmem:[#allocation5 + $0x4] sm:$0xf0]  ;;  %v516_v21 = vld [vmem:[#allocation5 + $0x4] sm:$0xf]  ;;  %v426_v22 = vld [vmem:[#allocation5 + $0x8] sm:$0xf0] }
  0x19   :  { %v151_v9 = vsel %vm149_vm0, %v131_v4, 0  ;;  %v154_v10 = vsel %vm149_vm0, %v132_v5, 0  ;;  %v425_v23 = vor.u32 %v517_v20, %v424_v19  ;;  %v429_v24 = vor.u32 %v516_v21, %v426_v22  ;;  %v84_v26 = vld [vmem:[#allocation2 + $0x8] sm:$0xff]  ;;  %v529_v28 = vld [vmem:[#allocation8 + $0x38] sm:$0xff]  ;;  %v528_v30 = vld [vmem:[#allocation8 + $0x30] sm:$0xff]  ;;  %s407_s18 = sshll.u32 %s753_s5, 4  ;;  %s408_s18 = int_to_ptr.hbm [resolvable:$true] %s407_s18 }
  0x1a   :  { %160 = vmatpush.bf16.msra.mxu0 %v151_v9  ;;  %183 = vmatpush.bf16.msra.mxu1 %v154_v10  ;;  %v88_v27 = vpack.c.bf16 %v84_v26, %v83_v25  ;;  %vm139_vm1 = vcmask 408576   ;;  %v537_v29 = vld [vmem:[#allocation8 + $0x78] sm:$0xff]  ;;  %v536_v31 = vld [vmem:[#allocation8 + $0x70] sm:$0xff]  ;;  %v527_v32 = vld [vmem:[#allocation8 + $0x28] sm:$0xff] }
  0x1b   :  { %350 = vmatpush.bf16.msra.mxu2 %v529_v28  ;;  %373 = vmatpush.bf16.msra.mxu3 %v537_v29  ;;  %v535_v33 = vld [vmem:[#allocation8 + $0x68] sm:$0xff]  ;;  %v86_v35 = vld [vmem:[#allocation2 + $0x18] sm:$0xff]  ;;  %v526_v36 = vld [vmem:[#allocation8 + $0x20] sm:$0xff] }
  0x1c   :  { %v85_v34 = vld [vmem:[#allocation2 + $0x10] sm:$0xff]  ;;  %v534_v37 = vld [vmem:[#allocation8 + $0x60] sm:$0xff]  ;;  %v525_v41 = vld [vmem:[#allocation8 + $0x18] sm:$0xff] }
  0x1d   :  { %v89_v38 = vpack.c.bf16 %v86_v35, %v85_v34  ;;  %v87_v39 = vld [vmem:[#allocation2 + $0x20] sm:$0xff]  ;;  %v524_v43 = vld [vmem:[#allocation8 + $0x10] sm:$0xff]  ;;  %v523_v45 = vld [vmem:[#allocation8 + $0x8] sm:$0xff] }
  0x1e   :  { %161 = vmatpush.bf16.msra.mxu0 %v441_v11  ;;  %184 = vmatpush.bf16.msra.mxu1 %v445_v12  ;;  %v90_v40 = vpack.c.bf16 %v87_v39, %v87_v39  ;;  %v533_v42 = vld [vmem:[#allocation8 + $0x58] sm:$0xff]  ;;  %v532_v44 = vld [vmem:[#allocation8 + $0x50] sm:$0xff]  ;;  %v531_v46 = vld [vmem:[#allocation8 + $0x48] sm:$0xff] }
  0x1f   :  { %351 = vmatpush.bf16.msra.mxu2 %v528_v30  ;;  %374 = vmatpush.bf16.msra.mxu3 %v536_v31  ;;  %v522_v47 = vld [vmem:[#allocation8] sm:$0xff]  ;;  %v98_v49 = vld [vmem:[#allocation7] sm:$0x3] }
  0x20   :  { %v530_v48 = vld [vmem:[#allocation8 + $0x40] sm:$0xff]  ;;  %v100_v52 = vperm.slane %v98_v49, 0  ;;  %v101_v53 = vperm.slane %v98_v49, 1  ;;  %v547_v26 = vld [vmem:[%s752_s4] ss:$0 sm:$0xff]  ;;  %s684_s4 = smov [#allocation10]  }
  0x21   :  { %s405_s15 = sshll.u32 %s684_s4, 4  ;;  %s406_s15 = int_to_ptr.vmem [resolvable:$true] %s405_s15 }
  0x22   :  { %162 = vmatpush.bf16.msra.mxu0 %v433_v17  ;;  %185 = vmatpush.bf16.msra.mxu1 %v437_v18 }
  0x23   :  { %352 = vmatpush.bf16.msra.mxu2 %v527_v32  ;;  %375 = vmatpush.bf16.msra.mxu3 %v535_v33 }
  0x26   :  { %163 = vmatpush.bf16.msra.mxu0 %v425_v23  ;;  %186 = vmatpush.bf16.msra.mxu1 %v429_v24 }
  0x27   :  { %353 = vmatpush.bf16.msra.mxu2 %v526_v36  ;;  %376 = vmatpush.bf16.msra.mxu3 %v534_v37 }
  0x29   :  { %446 = vmatmul.msk.bf16.vlgmr.msra.gmra.mxu0 %vm139_vm1, %v88_v27  ;;  %449 = vmatmul.msk.bf16.vlgmr.msra.gmra.mxu1 %vm139_vm1, %v88_v27 }
  0x2b   :  { %354 = vmatpush.bf16.msra.mxu2 %v525_v41  ;;  %377 = vmatpush.bf16.msra.mxu3 %v533_v42 }
  0x2f   :  { %355 = vmatpush.bf16.msra.mxu2 %v524_v43  ;;  %378 = vmatpush.bf16.msra.mxu3 %v532_v44 }
  0x33   :  { %356 = vmatpush.bf16.msra.mxu2 %v523_v45  ;;  %379 = vmatpush.bf16.msra.mxu3 %v531_v46 }
  0x37   :  { %357 = vmatpush.bf16.msra.mxu2 %v522_v47  ;;  %380 = vmatpush.bf16.msra.mxu3 %v530_v48 }
  0x39   :  { %447 = vmatmul.msk.bf16.gmra.mxu0 %vm139_vm1, %v89_v38  ;;  %450 = vmatmul.msk.bf16.gmra.mxu1 %vm139_vm1, %v89_v38 }
  0x49   :  { %448 = vmatmul.msk.bf16.gmra.mxu0 %vm139_vm1, %v90_v40  ;;  %451 = vmatmul.msk.bf16.gmra.mxu1 %vm139_vm1, %v90_v40 }
  0xa6   :  { %v165_v50 = vpop.f32.mrf.mxu0  ;;  %v188_v51 = vpop.f32.mrf.mxu1 }
  0xa7   :  { %v166_v54 = vadd.f32 %v165_v50, %v100_v52  ;;  %v189_v55 = vadd.f32 %v188_v51, %v101_v53 }
  0xa9   :  { %v202_v60 = vmax.f32 %v166_v54, 0.0  ;;  %v203_v61 = vmax.f32 %v189_v55, 0.0 }
  0xae   :  { %v167_v56 = vpop.f32.mrf.mxu0  ;;  %v190_v57 = vpop.f32.mrf.mxu1 }
  0xaf   :  { %v168_v58 = vadd.f32 %v167_v56, %v100_v52  ;;  %v191_v59 = vadd.f32 %v190_v57, %v101_v53 }
  0xb1   :  { %v204_v62 = vmax.f32 %v168_v58, 0.0  ;;  %v205_v63 = vmax.f32 %v191_v59, 0.0 }
  0xb3   :  { %v212_v0 = vpack.c.bf16 %v204_v62, %v202_v60  ;;  %v213_v1 = vpack.c.bf16 %v205_v63, %v203_v61 }
  0xb5   :  { %358 = vmatmul.bf16.vlgmr.msra.gmra.mxu2 %v212_v0  ;;  %381 = vmatmul.bf16.vlgmr.msra.gmra.mxu3 %v213_v1 }
  0xb6   :  { %v170_v2 = vpop.f32.mrf.mxu0  ;;  %v193_v3 = vpop.f32.mrf.mxu1 }
  0xb7   :  { %v171_v4 = vadd.f32 %v170_v2, %v100_v52  ;;  %v194_v5 = vadd.f32 %v193_v3, %v101_v53 }
  0xb9   :  { %v206_v10 = vmax.f32 %v171_v4, 0.0  ;;  %v207_v11 = vmax.f32 %v194_v5, 0.0 }
  0xbe   :  { %v172_v6 = vpop.f32.mrf.mxu0  ;;  %v195_v7 = vpop.f32.mrf.mxu1 }
  0xbf   :  { %v173_v8 = vadd.f32 %v172_v6, %v100_v52  ;;  %v196_v9 = vadd.f32 %v195_v7, %v101_v53 }
  0xc1   :  { %v208_v12 = vmax.f32 %v173_v8, 0.0  ;;  %v209_v13 = vmax.f32 %v196_v9, 0.0 }
  0xc3   :  { %v214_v14 = vpack.c.bf16 %v208_v12, %v206_v10  ;;  %v215_v15 = vpack.c.bf16 %v209_v13, %v207_v11 }
  0xc5   :  { %363 = vmatmul.bf16.gmra.mxu2 %v214_v14  ;;  %386 = vmatmul.bf16.gmra.mxu3 %v215_v15 }
  0xc6   :  { %v175_v16 = vpop.f32.mrf.mxu0  ;;  %v198_v17 = vpop.f32.mrf.mxu1 }
  0xc7   :  { %v176_v18 = vadd.f32 %v175_v16, %v100_v52  ;;  %v199_v19 = vadd.f32 %v198_v17, %v101_v53 }
  0xc9   :  { %v210_v20 = vmax.f32 %v176_v18, 0.0  ;;  %v211_v21 = vmax.f32 %v199_v19, 0.0 }
  0xcb   :  { %v216_v24 = vpack.c.bf16 %v210_v20, %v210_v20  ;;  %v217_v25 = vpack.c.bf16 %v211_v21, %v211_v21 }
  0xce   :  { %v177_v22 = vpop.f32.mrf.mxu0  ;;  %v200_v23 = vpop.f32.mrf.mxu1 }
  0xd5   :  { %368 = vmatmul.bf16.gmra.mxu2 %v216_v24  ;;  %391 = vmatmul.bf16.gmra.mxu3 %v217_v25 }
 0x138   :  { %v359_v27 = vpop.f32.mrf.mxu2  ;;  %v382_v28 = vpop.f32.mrf.mxu3 }
 0x139   :  { %v360_v29 = vadd.f32 %v547_v26, %v359_v27 }
 0x13b   :  { %v383_v30 = vadd.f32 %v382_v28, %v360_v29 }
 0x13d   :  { %396 = vst [vmem:[#allocation10] sm:$0xff] %v383_v30 }
 0x140   :  { %v361_v31 = vpop.f32.mrf.mxu2  ;;  %v384_v32 = vpop.f32.mrf.mxu3 }
 0x141   :  { %v362_v33 = vadd.f32 %v547_v26, %v361_v31 }
 0x143   :  { %v385_v34 = vadd.f32 %v384_v32, %v362_v33 }
 0x145   :  { %397 = vst [vmem:[#allocation10 + $0x8] sm:$0xff] %v385_v34 }
 0x148   :  { %v364_v35 = vpop.f32.mrf.mxu2  ;;  %v387_v36 = vpop.f32.mrf.mxu3 }
 0x149   :  { %v365_v37 = vadd.f32 %v547_v26, %v364_v35 }
 0x14b   :  { %v388_v38 = vadd.f32 %v387_v36, %v365_v37 }
 0x14d   :  { %398 = vst [vmem:[#allocation10 + $0x10] sm:$0xff] %v388_v38 }
 0x150   :  { %v366_v39 = vpop.f32.mrf.mxu2  ;;  %v389_v40 = vpop.f32.mrf.mxu3 }
 0x151   :  { %v367_v41 = vadd.f32 %v547_v26, %v366_v39 }
 0x153   :  { %v390_v42 = vadd.f32 %v389_v40, %v367_v41 }
 0x155   :  { %399 = vst [vmem:[#allocation10 + $0x18] sm:$0xff] %v390_v42 }
 0x158   :  { %v369_v43 = vpop.f32.mrf.mxu2  ;;  %v392_v44 = vpop.f32.mrf.mxu3 }
 0x159   :  { %v370_v45 = vadd.f32 %v547_v26, %v369_v43 }
 0x15b   :  { %v393_v46 = vadd.f32 %v392_v44, %v370_v45 }
 0x15d   :  { %400 = vst [vmem:[#allocation10 + $0x20] sm:$0xff] %v393_v46 }
 0x15e   :  { %413 = dma.vmem_to_hbm [thread:$0]  %s406_s15, 640, %s408_s18, [#allocation4], %s677_s26, %s677_s26, %s678_s27  }
 0x160   :  { %v371_v47 = vpop.f32.mrf.mxu2  ;;  %v394_v48 = vpop.f32.mrf.mxu3 }
 0x161   :  { %674 = dma.done.wait [#allocation4], 640  }
 0x162   :  { %675 = vsyncadd [#allocation4], 4294966656 }
 0x163   :  { %418 = vsyncpa [#allocation3], 1 }
 0x164   :  { %419 = vsyncpa [#allocation6], 1 }
 0x165   :  { %420 = vsyncpa [#allocation9], 1 }
 0x166   :  { %421 = vsyncpa [#allocation4], 1 }

</bundles_post_ra>
